<compile_context>
chip_gen: v7x
topology: tpu7x:2x2x1
jax: 0.10.0
libtpu: 0.0.40
codegen_flags: <defaults>
</compile_context>

<pallas_src>
import functools

import jax
import jax.numpy as jnp
from jax.experimental import pallas as pl
from jax.experimental.pallas import tpu as pltpu

NUM_BITS = 8
NUM_GROUPS = 4
_QMAX = 2.0 ** NUM_BITS - 1.0


# --------------------------- Pallas kernels ---------------------------------

def _minmax_kernel(x_ref, mn_ref, isc_ref, acc_min, acc_max, *,
                   num_groups, group_size):
    """Pass 1: running elementwise min/max + per-group reduce in the epilogue.

    x_ref   : (TM, H) tile of the flattened hidden states (native dtype).
    mn_ref  : (8, H) output, per-group min broadcast across each group's lanes.
    isc_ref : (8, H) output, per-group 1/scale broadcast likewise.
    acc_min/acc_max : (8, H) VMEM scratch accumulators (persist across grid).
    """
    @pl.when(pl.program_id(0) == 0)
    def _init():
        acc_min[...] = jnp.full(acc_min.shape, jnp.inf, dtype=jnp.float32)
        acc_max[...] = jnp.full(acc_max.shape, -jnp.inf, dtype=jnp.float32)

    x = x_ref[...].astype(jnp.float32)            # (TM, H)
    tm, h = x.shape
    # Fold TM rows down to 8 sublanes with elementwise (VPU-only) min/max:
    xr = x.reshape(tm // 8, 8, h)
    tile_min = jnp.min(xr, axis=0)                # reduce over leading (vreg) axis
    tile_max = jnp.max(xr, axis=0)
    acc_min[...] = jnp.minimum(acc_min[...], tile_min)
    acc_max[...] = jnp.maximum(acc_max[...], tile_max)

    # Cross-lane/sublane per-group reduction happens exactly once, at the end.
    @pl.when(pl.program_id(0) == pl.num_programs(0) - 1)
    def _finalize():
        amin = acc_min[...]
        amax = acc_max[...]
        col = jax.lax.broadcasted_iota(jnp.int32, (8, h), 1)
        mn_b = jnp.zeros((8, h), jnp.float32)
        isc_b = jnp.zeros((8, h), jnp.float32)
        for g in range(num_groups):               # static, tiny, once per call
            lo = g * group_size
            hi = lo + group_size
            gmin = jnp.min(amin[:, lo:hi])
            gmax = jnp.max(amax[:, lo:hi])
            scale = (gmax - gmin) / _QMAX
            # TODO(synk): scale == 0 (constant group) yields inf/nan, exactly
            # like the PyTorch reference; no epsilon added to preserve semantics.
            inv = 1.0 / scale
            in_g = (col >= lo) & (col < hi)
            mn_b = jnp.where(in_g, gmin, mn_b)
            isc_b = jnp.where(in_g, inv, isc_b)
        mn_ref[...] = mn_b
        isc_ref[...] = isc_b


def _quant_kernel(x_ref, mn_ref, isc_ref, o_ref):
    """Pass 2: elementwise quantize with precomputed reciprocal scale."""
    x = x_ref[...].astype(jnp.float32)            # (TM, H)
    mn = mn_ref[0:1, :]                           # (1, H) broadcasts over rows
    isc = isc_ref[0:1, :]
    o_ref[...] = jnp.round((x - mn) * isc).astype(o_ref.dtype)


def _fused_kernel(x_ref, o_ref, *, num_groups, group_size):
    """Single-pass fused kernel for tensors that comfortably fit in VMEM."""
    x = x_ref[...].astype(jnp.float32)            # (M, H), resident in VMEM
    _, h = x.shape
    col = jax.lax.broadcasted_iota(jnp.int32, (1, h), 1)
    mn_b = jnp.zeros((1, h), jnp.float32)
    isc_b = jnp.zeros((1, h), jnp.float32)
    for g in range(num_groups):
        lo = g * group_size
        hi = lo + group_size
        grp = x[:, lo:hi]
        gmin = jnp.min(grp)
        gmax = jnp.max(grp)
        scale = (gmax - gmin) / _QMAX
        inv = 1.0 / scale
        in_g = (col >= lo) & (col < hi)
        mn_b = jnp.where(in_g, gmin, mn_b)
        isc_b = jnp.where(in_g, inv, isc_b)
    o_ref[...] = jnp.round((x - mn_b) * isc_b).astype(o_ref.dtype)


# ------------------------------ wrapper --------------------------------------

def _choose_tile_m(m_rows: int, h: int,
                   target_bytes: int = 8 << 20, max_rows: int = 1024) -> int:
    """Pick a large row tile (multiple of 8) targeting ~8 MiB of f32 per tile."""
    rows = max(8, min(max_rows, target_bytes // max(1, h * 4)))
    rows = (rows // 8) * 8
    m_pad8 = ((m_rows + 7) // 8) * 8
    return max(8, min(rows, m_pad8))


def kivi_group_quantize(hidden_states: jax.Array, *,
                        tile_m: int | None = None,
                        force_two_pass: bool = False) -> jax.Array:
    """Equivalent of LlamaAttention_KIVI.forward()[0] (the quantized tensor)."""
    B, S, H = hidden_states.shape
    assert H % NUM_GROUPS == 0
    group_size = H // NUM_GROUPS
    M = B * S
    out_dtype = hidden_states.dtype

    x = hidden_states.reshape(M, H)               # native dtype, no HBM f32 copy

    # ---- fused single-tile path (small/medium tensors) ----------------------
    if not force_two_pass and M * H * 4 <= (2 << 20):
        q = pl.pallas_call(
            functools.partial(_fused_kernel,
                              num_groups=NUM_GROUPS, group_size=group_size),
            out_shape=jax.ShapeDtypeStruct((M, H), out_dtype),
        )(x)
        return q.reshape(B, S, H)

    # ---- two-pass tiled path -------------------------------------------------
    if tile_m is None:
        tile_m = _choose_tile_m(M, H)
    else:
        tile_m = max(8, (int(tile_m) // 8) * 8)
    Mp = pl.cdiv(M, tile_m) * tile_m
    if Mp != M:
        # Edge-replicated rows: duplicates cannot change any group min/max.
        x = jnp.pad(x, ((0, Mp - M), (0, 0)), mode="edge")
    grid_m = Mp // tile_m

    vmem_limit = 48 * 1024 * 1024                 # safe on v5e/v6e (128 MiB) & v7x (64 MiB)

    # Pass 1: per-group global min and 1/scale (reduction over row tiles).
    mn, isc = pl.pallas_call(
        functools.partial(_minmax_kernel,
                          num_groups=NUM_GROUPS, group_size=group_size),
        out_shape=(jax.ShapeDtypeStruct((8, H), jnp.float32),
                   jax.ShapeDtypeStruct((8, H), jnp.float32)),
        grid_spec=pltpu.PrefetchScalarGridSpec(
            num_scalar_prefetch=0,
            grid=(grid_m,),
            in_specs=[pl.BlockSpec((tile_m, H), lambda i: (i, 0))],
            out_specs=(pl.BlockSpec((8, H), lambda i: (0, 0)),
                       pl.BlockSpec((8, H), lambda i: (0, 0))),
            scratch_shapes=[pltpu.VMEM((8, H), jnp.float32),
                            pltpu.VMEM((8, H), jnp.float32)]),
        compiler_params=pltpu.CompilerParams(
            dimension_semantics=("arbitrary",),
            vmem_limit_bytes=vmem_limit),
    )(x)

    # Pass 2: elementwise quantization, tiled over rows.
    q = pl.pallas_call(
        _quant_kernel,
        out_shape=jax.ShapeDtypeStruct((Mp, H), out_dtype),
        grid_spec=pltpu.PrefetchScalarGridSpec(
            num_scalar_prefetch=0,
            grid=(grid_m,),
            in_specs=[pl.BlockSpec((tile_m, H), lambda i: (i, 0)),
                      pl.BlockSpec((8, H), lambda i: (0, 0)),
                      pl.BlockSpec((8, H), lambda i: (0, 0))],
            out_specs=pl.BlockSpec((tile_m, H), lambda i: (i, 0))),
        compiler_params=pltpu.CompilerParams(
            dimension_semantics=("parallel",),
            vmem_limit_bytes=vmem_limit),
    )(x, mn, isc)

    if Mp != M:
        q = q[:M]
    return q.reshape(B, S, H)


# ------------------------------ reference -------------------------------------

def kivi_group_quantize_ref(h: jax.Array) -> jax.Array:
    """Pure-JAX mirror of the PyTorch forward() (divide form)."""
    H = h.shape[-1]
    gs = H // NUM_GROUPS
    h32 = h.astype(jnp.float32)
    out = jnp.zeros_like(h32)
    for g in range(NUM_GROUPS):
        grp = h32[..., g * gs:(g + 1) * gs]
        gmin = grp.min()
        gmax = grp.max()
        scale = (gmax - gmin) / _QMAX
        out = out.at[..., g * gs:(g + 1) * gs].set(jnp.round((grp - gmin) / scale))
    return out.astype(h.dtype)


def _check(out: jax.Array, ref: jax.Array) -> None:
    assert out.shape == ref.shape and out.dtype == ref.dtype
    diff = jnp.abs(out.astype(jnp.float32) - ref.astype(jnp.float32))
    max_err = float(diff.max())
    frac_off = float((diff > 1e-6).mean())
    # Multiply-by-reciprocal vs exact divide can flip round() by 1 LSB only at
    # exact .5 boundaries; allow that (rare) while catching any real bug.
    assert max_err <= 1.0 + 1e-6, f"max abs err = {max_err}"
    assert frac_off <= 5e-3, f"fraction of mismatched elements = {frac_off}"


# --------------------------------- main ---------------------------------------

if __name__ == "__main__":
    # Small config consistent with the module: hidden_size=32, num_heads=4,
    # head_dim=8, num_key_value_heads=2.
    hidden_size = 32
    num_heads = 4
    num_kv_heads = 2
    head_dim = hidden_size // num_heads
    B, S = 2, 8

    key = jax.random.PRNGKey(0)
    k_h, k_h2, k_q, k_k, k_v, k_o = jax.random.split(key, 6)

    # Parameters from __init__ (deterministic init).  They are NOT used by the
    # reference forward() — it only quantizes hidden_states — kept for fidelity.
    q_proj_w = jax.random.normal(k_q, (num_heads * head_dim, hidden_size), jnp.float32) * 0.02
    k_proj_w = jax.random.normal(k_k, (num_kv_heads * head_dim, hidden_size), jnp.float32) * 0.02
    v_proj_w = jax.random.normal(k_v, (num_kv_heads * head_dim, hidden_size), jnp.float32) * 0.02
    o_proj_w = jax.random.normal(k_o, (hidden_size, num_heads * head_dim), jnp.float32) * 0.02
    del q_proj_w, k_proj_w, v_proj_w, o_proj_w   # unused in forward()

    hidden_states = jax.random.normal(k_h, (B, S, hidden_size), jnp.float32)

    # Primary small-shape demo (takes the fused single-kernel path).
    out = jax.block_until_ready(kivi_group_quantize(hidden_states))
    _check(out, kivi_group_quantize_ref(hidden_states))

    # Also exercise the tiled two-pass path (multi-step grid accumulation).
    hs2 = jax.random.normal(k_h2, (B, 64, hidden_size), jnp.float32)
    out2 = jax.block_until_ready(
        kivi_group_quantize(hs2, tile_m=32, force_two_pass=True))
    _check(out2, kivi_group_quantize_ref(hs2))

    print("KERNEL_OK")
</pallas_src>

<mosaic_0001>
module attributes {stable_mosaic.version = 11 : i64} {
  func.func @_fused_kernel(%arg0: memref<16x32xf32, #tpu.memory_space<vmem>>, %arg1: memref<16x32xf32, #tpu.memory_space<vmem>>) attributes {dimension_semantics = [], scalar_prefetch = 0 : i64, scratch_operands = 0 : i64, tpu.core_type = #tpu.core_type<tc>} {
    %c0 = arith.constant 0 : index
    %c0_0 = arith.constant 0 : index
    %0 = vector.load %arg0[%c0, %c0_0] : memref<16x32xf32, #tpu.memory_space<vmem>>, vector<16x32xf32>
    %1 = tpu.iota {dimensions = array<i32: 1>} : vector<1x32xi32>
    %cst = arith.constant 0.000000e+00 : f32
    %2 = vector.broadcast %cst : f32 to vector<1x32xf32>
    %cst_1 = arith.constant 0.000000e+00 : f32
    %3 = vector.broadcast %cst_1 : f32 to vector<1x32xf32>
    %4 = vector.extract_strided_slice %0 {offsets = [0, 0], sizes = [16, 8], strides = [1, 1]} : vector<16x32xf32> to vector<16x8xf32>
    %5 = vector.shape_cast %4 : vector<16x8xf32> to vector<1x16x8xf32>
    %cst_2 = arith.constant dense<0x7F800000> : vector<1xf32>
    %6 = vector.multi_reduction <minimumf>, %5, %cst_2 [1, 2] : vector<1x16x8xf32> to vector<1xf32>
    %7 = vector.shape_cast %6 : vector<1xf32> to vector<1x1x1xf32>
    %8 = vector.extract %7[0, 0, 0] : f32 from vector<1x1x1xf32>
    %9 = vector.shape_cast %4 : vector<16x8xf32> to vector<1x16x8xf32>
    %cst_3 = arith.constant dense<0xFF800000> : vector<1xf32>
    %10 = vector.multi_reduction <maximumf>, %9, %cst_3 [1, 2] : vector<1x16x8xf32> to vector<1xf32>
    %11 = vector.shape_cast %10 : vector<1xf32> to vector<1x1x1xf32>
    %12 = vector.extract %11[0, 0, 0] : f32 from vector<1x1x1xf32>
    %13 = arith.subf %12, %8 : f32
    %cst_4 = arith.constant 2.550000e+02 : f32
    %14 = arith.divf %13, %cst_4 : f32
    %cst_5 = arith.constant 1.000000e+00 : f32
    %15 = arith.divf %cst_5, %14 : f32
    %c0_i32 = arith.constant 0 : i32
    %16 = vector.broadcast %c0_i32 : i32 to vector<1x32xi32>
    %17 = arith.cmpi sge, %1, %16 : vector<1x32xi32>
    %c8_i32 = arith.constant 8 : i32
    %18 = vector.broadcast %c8_i32 : i32 to vector<1x32xi32>
    %19 = arith.cmpi slt, %1, %18 : vector<1x32xi32>
    %20 = arith.andi %17, %19 : vector<1x32xi1>
    %21 = vector.broadcast %8 : f32 to vector<1x32xf32>
    %22 = arith.select %20, %21, %2 : vector<1x32xi1>, vector<1x32xf32>
    %23 = vector.broadcast %15 : f32 to vector<1x32xf32>
    %24 = arith.select %20, %23, %3 : vector<1x32xi1>, vector<1x32xf32>
    %25 = vector.extract_strided_slice %0 {offsets = [0, 8], sizes = [16, 8], strides = [1, 1]} : vector<16x32xf32> to vector<16x8xf32>
    %26 = vector.shape_cast %25 : vector<16x8xf32> to vector<1x16x8xf32>
    %cst_6 = arith.constant dense<0x7F800000> : vector<1xf32>
    %27 = vector.multi_reduction <minimumf>, %26, %cst_6 [1, 2] : vector<1x16x8xf32> to vector<1xf32>
    %28 = vector.shape_cast %27 : vector<1xf32> to vector<1x1x1xf32>
    %29 = vector.extract %28[0, 0, 0] : f32 from vector<1x1x1xf32>
    %30 = vector.shape_cast %25 : vector<16x8xf32> to vector<1x16x8xf32>
    %cst_7 = arith.constant dense<0xFF800000> : vector<1xf32>
    %31 = vector.multi_reduction <maximumf>, %30, %cst_7 [1, 2] : vector<1x16x8xf32> to vector<1xf32>
    %32 = vector.shape_cast %31 : vector<1xf32> to vector<1x1x1xf32>
    %33 = vector.extract %32[0, 0, 0] : f32 from vector<1x1x1xf32>
    %34 = arith.subf %33, %29 : f32
    %cst_8 = arith.constant 2.550000e+02 : f32
    %35 = arith.divf %34, %cst_8 : f32
    %cst_9 = arith.constant 1.000000e+00 : f32
    %36 = arith.divf %cst_9, %35 : f32
    %c8_i32_10 = arith.constant 8 : i32
    %37 = vector.broadcast %c8_i32_10 : i32 to vector<1x32xi32>
    %38 = arith.cmpi sge, %1, %37 : vector<1x32xi32>
    %c16_i32 = arith.constant 16 : i32
    %39 = vector.broadcast %c16_i32 : i32 to vector<1x32xi32>
    %40 = arith.cmpi slt, %1, %39 : vector<1x32xi32>
    %41 = arith.andi %38, %40 : vector<1x32xi1>
    %42 = vector.broadcast %29 : f32 to vector<1x32xf32>
    %43 = arith.select %41, %42, %22 : vector<1x32xi1>, vector<1x32xf32>
    %44 = vector.broadcast %36 : f32 to vector<1x32xf32>
    %45 = arith.select %41, %44, %24 : vector<1x32xi1>, vector<1x32xf32>
    %46 = vector.extract_strided_slice %0 {offsets = [0, 16], sizes = [16, 8], strides = [1, 1]} : vector<16x32xf32> to vector<16x8xf32>
    %47 = vector.shape_cast %46 : vector<16x8xf32> to vector<1x16x8xf32>
    %cst_11 = arith.constant dense<0x7F800000> : vector<1xf32>
    %48 = vector.multi_reduction <minimumf>, %47, %cst_11 [1, 2] : vector<1x16x8xf32> to vector<1xf32>
    %49 = vector.shape_cast %48 : vector<1xf32> to vector<1x1x1xf32>
    %50 = vector.extract %49[0, 0, 0] : f32 from vector<1x1x1xf32>
    %51 = vector.shape_cast %46 : vector<16x8xf32> to vector<1x16x8xf32>
    %cst_12 = arith.constant dense<0xFF800000> : vector<1xf32>
    %52 = vector.multi_reduction <maximumf>, %51, %cst_12 [1, 2] : vector<1x16x8xf32> to vector<1xf32>
    %53 = vector.shape_cast %52 : vector<1xf32> to vector<1x1x1xf32>
    %54 = vector.extract %53[0, 0, 0] : f32 from vector<1x1x1xf32>
    %55 = arith.subf %54, %50 : f32
    %cst_13 = arith.constant 2.550000e+02 : f32
    %56 = arith.divf %55, %cst_13 : f32
    %cst_14 = arith.constant 1.000000e+00 : f32
    %57 = arith.divf %cst_14, %56 : f32
    %c16_i32_15 = arith.constant 16 : i32
    %58 = vector.broadcast %c16_i32_15 : i32 to vector<1x32xi32>
    %59 = arith.cmpi sge, %1, %58 : vector<1x32xi32>
    %c24_i32 = arith.constant 24 : i32
    %60 = vector.broadcast %c24_i32 : i32 to vector<1x32xi32>
    %61 = arith.cmpi slt, %1, %60 : vector<1x32xi32>
    %62 = arith.andi %59, %61 : vector<1x32xi1>
    %63 = vector.broadcast %50 : f32 to vector<1x32xf32>
    %64 = arith.select %62, %63, %43 : vector<1x32xi1>, vector<1x32xf32>
    %65 = vector.broadcast %57 : f32 to vector<1x32xf32>
    %66 = arith.select %62, %65, %45 : vector<1x32xi1>, vector<1x32xf32>
    %67 = vector.extract_strided_slice %0 {offsets = [0, 24], sizes = [16, 8], strides = [1, 1]} : vector<16x32xf32> to vector<16x8xf32>
    %68 = vector.shape_cast %67 : vector<16x8xf32> to vector<1x16x8xf32>
    %cst_16 = arith.constant dense<0x7F800000> : vector<1xf32>
    %69 = vector.multi_reduction <minimumf>, %68, %cst_16 [1, 2] : vector<1x16x8xf32> to vector<1xf32>
    %70 = vector.shape_cast %69 : vector<1xf32> to vector<1x1x1xf32>
    %71 = vector.extract %70[0, 0, 0] : f32 from vector<1x1x1xf32>
    %72 = vector.shape_cast %67 : vector<16x8xf32> to vector<1x16x8xf32>
    %cst_17 = arith.constant dense<0xFF800000> : vector<1xf32>
    %73 = vector.multi_reduction <maximumf>, %72, %cst_17 [1, 2] : vector<1x16x8xf32> to vector<1xf32>
    %74 = vector.shape_cast %73 : vector<1xf32> to vector<1x1x1xf32>
    %75 = vector.extract %74[0, 0, 0] : f32 from vector<1x1x1xf32>
    %76 = arith.subf %75, %71 : f32
    %cst_18 = arith.constant 2.550000e+02 : f32
    %77 = arith.divf %76, %cst_18 : f32
    %cst_19 = arith.constant 1.000000e+00 : f32
    %78 = arith.divf %cst_19, %77 : f32
    %c24_i32_20 = arith.constant 24 : i32
    %79 = vector.broadcast %c24_i32_20 : i32 to vector<1x32xi32>
    %80 = arith.cmpi sge, %1, %79 : vector<1x32xi32>
    %c32_i32 = arith.constant 32 : i32
    %81 = vector.broadcast %c32_i32 : i32 to vector<1x32xi32>
    %82 = arith.cmpi slt, %1, %81 : vector<1x32xi32>
    %83 = arith.andi %80, %82 : vector<1x32xi1>
    %84 = vector.broadcast %71 : f32 to vector<1x32xf32>
    %85 = arith.select %83, %84, %64 : vector<1x32xi1>, vector<1x32xf32>
    %86 = vector.broadcast %78 : f32 to vector<1x32xf32>
    %87 = arith.select %83, %86, %66 : vector<1x32xi1>, vector<1x32xf32>
    %88 = vector.broadcast %85 : vector<1x32xf32> to vector<16x32xf32>
    %89 = arith.subf %0, %88 : vector<16x32xf32>
    %90 = vector.broadcast %87 : vector<1x32xf32> to vector<16x32xf32>
    %91 = arith.mulf %89, %90 : vector<16x32xf32>
    %92 = math.roundeven %91 : vector<16x32xf32>
    %c0_21 = arith.constant 0 : index
    %c0_22 = arith.constant 0 : index
    %93 = vector.load %arg1[%c0_21, %c0_22] : memref<16x32xf32, #tpu.memory_space<vmem>>, vector<16x32xf32>
    tpu.vector_store %arg1[%c0_21, %c0_22], %92 {strides = array<i32>} : memref<16x32xf32, #tpu.memory_space<vmem>>, vector<16x32xf32>,
    return
  }
}

</mosaic_0001>

<bundles_post_ra>
// kernel: tpu_custom_call.1
= control target key start
LH: loop header
LB: loop body
LE: loop exit
PB: predicated region body
PF: predicated region fallthrough
CT: control target
= control target key end

     0   :  { %6 = vsyncpa [#allocation3], 0  ;;  %s405_s0 = inlined_call_operand.hbm [shape: f32[16,32], index: 0, kind: input, shape index: {}]   ;;  %s406_s1 = inlined_call_operand.hbm [shape: f32[16,32], index: 1, kind: output, shape index: {}]  }
   0x1   :  { %7 = vsyncpa [#allocation4], 0  ;;  %s295_s6 = smov [#allocation2]   ;;  %s247_s10 = scalar_lea.hbm %s405_s0, 256 }
   0x2   :  { %s13_s7 = sshll.u32 %s295_s6, 4  ;;  %p248_p0 = scmp.ne.s32.totalorder %s405_s0, %s247_s10  ;;  %s14_s7 = int_to_ptr.vmem [resolvable:$true] %s13_s7 }
   0x3   :  { %p251_p1 = scmp.lt.u32.totalorder %s247_s10, %s405_s0 }
   0x5   :  { %p253_p2 = pnand %p251_p1, %p248_p0 }
   0x7   :  { %256 = shalt.err (!%p253_p2)
}
   0x8   :  { %s257_s15 = scalar_lea.vmem %s14_s7, 256  ;;  %p262_p4 = scmp.lt.s32.totalorder %s14_s7, %s14_s7 }
   0x9   :  { %p258_p3 = scmp.ne.s32.totalorder %s14_s7, %s257_s15  ;;  %p263_p5 = scmp.lt.s32.totalorder %s257_s15, %s257_s15 }
   0xb   :  { %p264_p6 = por %p263_p5, %p262_p4 }
   0xd   :  { %p265_p7 = pnand %p264_p6, %p258_p3 }
   0xf   :  { %268 = shalt.err (!%p265_p7)
}
  0x10   :  { %s296_s16 = smov 128   ;;  %s297_s17 = smov 8  }
  0x11   :  { %19 = dma.hbm_to_vmem [thread:$0]  %s405_s0, 256, %s14_s7, [#allocation3], %s296_s16, %s296_s16, %s297_s17  }
  0x12   :  { %291 = dma.done.wait [#allocation3], 256  }
  0x13   :  { %292 = vsyncadd [#allocation3], 4294967040  ;;  %vm27_vm0 = vcmask 64512   ;;  %vm66_vm1 = vcmask 130112   ;;  %v324_v0 = vld [vmem:[#allocation2] sm:$0xff]  ;;  %v326_v1 = vld [vmem:[#allocation2 + $0x8] sm:$0xff]  ;;  %v25_v56 = vlaneseq }
  0x14   :  { %v28_v2 = vsel %vm27_vm0, %v324_v0, inf  ;;  %v29_v3 = vsel %vm27_vm0, %v326_v1, inf  ;;  %v40_v4 = vsel %vm27_vm0, %v324_v0, -inf  ;;  %v41_v5 = vsel %vm27_vm0, %v326_v1, -inf  ;;  %s298_s10 = smov [#allocation5]  }
  0x15   :  { %v30_v6 = vmin.f32 %v28_v2, %v29_v3  ;;  %v67_v7 = vsel %vm66_vm1, %v324_v0, inf  ;;  %v68_v8 = vsel %vm66_vm1, %v326_v1, inf  ;;  %vm105_vm2 = vcmask 195712   ;;  %s197_s11 = sshll.u32 %s298_s10, 4  ;;  %s198_s11 = int_to_ptr.vmem [resolvable:$true] %s197_s11 }
  0x16   :  { %v69_v9 = vmin.f32 %v67_v7, %v68_v8  ;;  %v79_v10 = vsel %vm66_vm1, %v324_v0, -inf  ;;  %v80_v11 = vsel %vm66_vm1, %v326_v1, -inf  ;;  %v42_v12 = vmax.f32 %v40_v4, %v41_v5  ;;  %s269_s12 = scalar_lea.vmem %s198_s11, 256  ;;  %p274_p9 = scmp.lt.s32.totalorder %s198_s11, %s198_s11 }
  0x17   :  { %31 = vmin.xlane.f32.xlu0 %v30_v6  ;;  %v81_v13 = vmax.f32 %v79_v10, %v80_v11  ;;  %v106_v14 = vsel %vm105_vm2, %v324_v0, inf  ;;  %v107_v15 = vsel %vm105_vm2, %v326_v1, inf  ;;  %v118_v16 = vsel %vm105_vm2, %v324_v0, -inf  ;;  %p270_p8 = scmp.ne.s32.totalorder %s198_s11, %s269_s12  ;;  %p275_p10 = scmp.lt.s32.totalorder %s269_s12, %s269_s12 }
  0x18   :  { %70 = vmin.xlane.f32.xlu1 %v69_v9  ;;  %v119_v17 = vsel %vm105_vm2, %v326_v1, -inf  ;;  %v108_v18 = vmin.f32 %v106_v14, %v107_v15  ;;  %vm144_vm3 = vcmask 261312   ;;  %v347_v58 = vand.u32 127, %v25_v56 }
  0x19   :  { %v120_v19 = vmax.f32 %v118_v16, %v119_v17  ;;  %v157_v20 = vsel %vm144_vm3, %v324_v0, -inf  ;;  %v158_v21 = vsel %vm144_vm3, %v326_v1, -inf  ;;  %v145_v22 = vsel %vm144_vm3, %v324_v0, inf  ;;  %p276_p11 = por %p275_p10, %p274_p9 }
  0x1a   :  { %v146_v23 = vsel %vm144_vm3, %v326_v1, inf  ;;  %v159_v24 = vmax.f32 %v157_v20, %v158_v21  ;;  %vm98_vm4 = vcmp.ge.s32.totalorder %v347_v58, 8  ;;  %vm99_vm5 = vcmp.lt.s32.totalorder %v347_v58, 16 }
  0x1b   :  { %43 = vmax.xlane.f32.xlu0 %v42_v12  ;;  %v147_v25 = vmin.f32 %v145_v22, %v146_v23  ;;  %vm60_vm6 = vcmp.lt.s32.totalorder %v347_v58, 8  ;;  %vm355_vm7 = vmand %vm98_vm4, %vm99_vm5  ;;  %vm137_vm8 = vcmp.ge.s32.totalorder %v347_v58, 16  ;;  %vm138_vm9 = vcmp.lt.s32.totalorder %v347_v58, 24  ;;  %p277_p12 = pnand %p276_p11, %p270_p8 }
  0x1c   :  { %82 = vmax.xlane.f32.xlu1 %v81_v13  ;;  %vm366_vm10 = vmand %vm137_vm8, %vm138_vm9  ;;  %vm176_vm11 = vcmp.ge.s32.totalorder %v347_v58, 24  ;;  %vm177_vm12 = vcmp.lt.s32.totalorder %v347_v58, 32  ;;  %vm189_vm14 = vcmask 261120  }
  0x1d   :  { %vm378_vm13 = vmand %vm176_vm11, %vm177_vm12 }
  0x1f   :  { %109 = vmin.xlane.f32.xlu0 %v108_v18 }
  0x20   :  { %121 = vmax.xlane.f32.xlu1 %v120_v19 }
  0x23   :  { %148 = vmin.xlane.f32.xlu0 %v147_v25 }
  0x24   :  { %160 = vmax.xlane.f32.xlu1 %v159_v24 }
  0xa4   :  { %v32_v26 = vpop.xlane.xlu0 %31 }
  0xa5   :  { %v33_v27 = vrot.slane %v32_v26, 4  ;;  %v71_v40 = vpop.xlane.xlu1 %70 }
  0xa6   :  { %v72_v42 = vrot.slane %v71_v40, 4 }
  0xa7   :  { %v34_v28 = vmin.f32 %v32_v26, %v33_v27 }
  0xa8   :  { %v44_v29 = vpop.xlane.xlu0 %43  ;;  %v73_v44 = vmin.f32 %v71_v40, %v72_v42 }
  0xa9   :  { %v35_v30 = vrot.slane %v34_v28, 2  ;;  %v45_v31 = vrot.slane %v44_v29, 4  ;;  %v83_v41 = vpop.xlane.xlu1 %82 }
  0xaa   :  { %v84_v43 = vrot.slane %v83_v41, 4  ;;  %v74_v46 = vrot.slane %v73_v44, 2 }
  0xab   :  { %v46_v32 = vmax.f32 %v44_v29, %v45_v31  ;;  %v36_v33 = vmin.f32 %v34_v28, %v35_v30 }
  0xac   :  { %v85_v45 = vmax.f32 %v83_v41, %v84_v43  ;;  %v75_v49 = vmin.f32 %v73_v44, %v74_v46  ;;  %v110_v57 = vpop.xlane.xlu0 %109 }
  0xad   :  { %v47_v34 = vrot.slane %v46_v32, 2  ;;  %v37_v35 = vrot.slane %v36_v33, 1  ;;  %v122_v59 = vpop.xlane.xlu1 %121  ;;  %v111_v60 = vrot.slane %v110_v57, 4 }
  0xae   :  { %v86_v47 = vrot.slane %v85_v45, 2  ;;  %v76_v51 = vrot.slane %v75_v49, 1  ;;  %v123_v62 = vrot.slane %v122_v59, 4 }
  0xaf   :  { %v38_v36 = vmin.f32 %v36_v33, %v37_v35  ;;  %v48_v37 = vmax.f32 %v46_v32, %v47_v34  ;;  %v112_v2 = vmin.f32 %v110_v57, %v111_v60 }
  0xb0   :  { %v87_v50 = vmax.f32 %v85_v45, %v86_v47  ;;  %v77_v54 = vmin.f32 %v75_v49, %v76_v51  ;;  %v124_v5 = vmax.f32 %v122_v59, %v123_v62  ;;  %v149_v17 = vpop.xlane.xlu0 %148 }
  0xb1   :  { %209 = vpush %v38_v36  ;;  %v49_v38 = vrot.slane %v48_v37, 1  ;;  %v113_v7 = vrot.slane %v112_v2, 2  ;;  %v161_v18 = vpop.xlane.xlu1 %160  ;;  %v150_v20 = vrot.slane %v149_v17, 4 }
  0xb2   :  { %v88_v52 = vrot.slane %v87_v50, 1  ;;  %v125_v8 = vrot.slane %v124_v5, 2  ;;  %v162_v21 = vrot.slane %v161_v18, 4 }
  0xb3   :  { %v50_v39 = vmax.f32 %v48_v37, %v49_v38  ;;  %v114_v10 = vmin.f32 %v112_v2, %v113_v7  ;;  %v151_v25 = vmin.f32 %v149_v17, %v150_v20 }
  0xb4   :  { %v89_v55 = vmax.f32 %v87_v50, %v88_v52  ;;  %v126_v11 = vmax.f32 %v124_v5, %v125_v8  ;;  %v163_v28 = vmax.f32 %v161_v18, %v162_v21 }
  0xb5   :  { %211 = vpush %v50_v39  ;;  %v115_v12 = vrot.slane %v114_v10, 1  ;;  %v152_v30 = vrot.slane %v151_v25, 2 }
  0xb6   :  { %v127_v13 = vrot.slane %v126_v11, 1  ;;  %v164_v31 = vrot.slane %v163_v28, 2 }
  0xb7   :  { %v116_v15 = vmin.f32 %v114_v10, %v115_v12  ;;  %v153_v33 = vmin.f32 %v151_v25, %v152_v30 }
  0xb8   :  { %v128_v16 = vmax.f32 %v126_v11, %v127_v13  ;;  %v165_v34 = vmax.f32 %v163_v28, %v164_v31 }
  0xb9   :  { %v154_v35 = vrot.slane %v153_v33, 1 }
  0xba   :  { %v166_v36 = vrot.slane %v165_v34, 1 }
  0xbb   :  { %v155_v38 = vmin.f32 %v153_v33, %v154_v35 }
  0xbc   :  { %v167_v39 = vmax.f32 %v165_v34, %v166_v36 }
  0xe2   :  { %s344_s0 = spop %209 }
  0xe3   :  { %v62_v61 = vstv %s344_s0 }
  0xe4   :  { %v63_v3 = vsel %vm60_vm6, %v62_v61, 0.0 }
  0xe6   :  { %s212_s20 = spop %211 }
  0xe7   :  { %s52_s21 = ssub.f32 %s212_s20, %s344_s0 }
  0xe9   :  { %s55_s22 = smul.f32 0.003921569, %s52_s21 }
  0xeb   :  { %v56_v48 = vstv %s55_s22 }
  0xec   :  { %239 = vrcp.f32 %v56_v48 }
  0xf6   :  { %v240_v53 = vpop.eup %239 }
  0xf7   :  { %213 = vpush %v240_v53 }
  0xf8   :  { %215 = vpush %v77_v54 }
  0xf9   :  { %217 = vpush %v89_v55 }
 0x128   :  { %s353_s23 = spop %213 }
 0x129   :  { %s216_s24 = spop %215  ;;  %v64_v19 = vstv %s353_s23 }
 0x12a   :  { %v101_v4 = vstv %s216_s24  ;;  %s218_s25 = spop %217  ;;  %v65_v23 = vsel %vm60_vm6, %v64_v19, 0.0 }
 0x12b   :  { %v102_v6 = vsel %vm355_vm7, %v101_v4, %v63_v3  ;;  %s91_s26 = ssub.f32 %s218_s25, %s216_s24 }
 0x12d   :  { %s94_s27 = smul.f32 0.003921569, %s91_s26 }
 0x12f   :  { %v95_v9 = vstv %s94_s27 }
 0x130   :  { %241 = vrcp.f32 %v95_v9 }
 0x13a   :  { %v242_v14 = vpop.eup %241 }
 0x13b   :  { %219 = vpush %v242_v14 }
 0x13c   :  { %221 = vpush %v116_v15 }
 0x13d   :  { %223 = vpush %v128_v16 }
 0x16c   :  { %s220_s28 = spop %219 }
 0x16d   :  { %v103_v24 = vstv %s220_s28  ;;  %s222_s29 = spop %221 }
 0x16e   :  { %v104_v26 = vsel %vm355_vm7, %v103_v24, %v65_v23  ;;  %v140_v27 = vstv %s222_s29  ;;  %s224_s30 = spop %223 }
 0x16f   :  { %v141_v29 = vsel %vm366_vm10, %v140_v27, %v102_v6  ;;  %s130_s2 = ssub.f32 %s224_s30, %s222_s29 }
 0x171   :  { %s133_s3 = smul.f32 0.003921569, %s130_s2 }
 0x173   :  { %v134_v32 = vstv %s133_s3 }
 0x174   :  { %243 = vrcp.f32 %v134_v32 }
 0x17e   :  { %v244_v37 = vpop.eup %243 }
 0x17f   :  { %225 = vpush %v244_v37 }
 0x180   :  { %227 = vpush %v155_v38 }
 0x181   :  { %229 = vpush %v167_v39 }
 0x1b0   :  { %s226_s4 = spop %225 }
 0x1b1   :  { %v142_v41 = vstv %s226_s4  ;;  %s228_s5 = spop %227 }
 0x1b2   :  { %v143_v42 = vsel %vm366_vm10, %v142_v41, %v104_v26  ;;  %v179_v43 = vstv %s228_s5  ;;  %s230_s6 = spop %229 }
 0x1b3   :  { %v180_v44 = vsel %vm378_vm13, %v179_v43, %v141_v29  ;;  %s169_s7 = ssub.f32 %s230_s6, %s228_s5 }
 0x1b4   :  { %v183_v48 = vsub.f32 %v324_v0, %v180_v44  ;;  %v184_v49 = vsub.f32 %v326_v1, %v180_v44 }
 0x1b5   :  { %s172_s8 = smul.f32 0.003921569, %s169_s7 }
 0x1b7   :  { %v173_v45 = vstv %s172_s8 }
 0x1b8   :  { %245 = vrcp.f32 %v173_v45 }
 0x1c2   :  { %v246_v46 = vpop.eup %245 }
 0x1c3   :  { %231 = vpush %v246_v46 }
 0x1f4   :  { %s232_s9 = spop %231 }
 0x1f5   :  { %v181_v47 = vstv %s232_s9 }
 0x1f6   :  { %v182_v50 = vsel %vm378_vm13, %v181_v47, %v143_v42 }
 0x1f7   :  { %v185_v51 = vmul.f32 %v183_v48, %v182_v50  ;;  %v186_v52 = vmul.f32 %v184_v49, %v182_v50 }
 0x1f9   :  { %v233_v53 = vround.rtne.f32 %v185_v51  ;;  %v234_v54 = vround.rtne.f32 %v186_v52 }
 0x1fb   :  { %190 = vst.msk [vmem:[#allocation5] sm:$0xff] %vm189_vm14, %v233_v53  ;;  %191 = vst.msk [vmem:[#allocation5 + $0x8] sm:$0xff] %vm189_vm14, %v234_v54 }
 0x1fc   :  { %280 = shalt.err (!%p277_p12)
}
 0x1fd   :  { %s281_s15 = scalar_lea.hbm %s406_s1, 256 }
 0x1fe   :  { %p282_p13 = scmp.ne.s32.totalorder %s406_s1, %s281_s15  ;;  %p285_p0 = scmp.lt.u32.totalorder %s281_s15, %s406_s1 }
 0x200   :  { %p287_p1 = pnand %p285_p0, %p282_p13 }
 0x202   :  { %290 = shalt.err (!%p287_p1)
}
 0x203   :  { %203 = dma.vmem_to_hbm [thread:$0]  %s198_s11, 256, %s406_s1, [#allocation4], %s296_s16, %s296_s16, %s297_s17  }
 0x204   :  { %293 = dma.done.wait [#allocation4], 256  }
 0x205   :  { %294 = vsyncadd [#allocation4], 4294967040 }
 0x206   :  { %207 = vsyncpa [#allocation3], 1 }
 0x207   :  { %208 = vsyncpa [#allocation4], 1 }

</bundles_post_ra>
